<compile_context>
chip_gen: v7x
topology: tpu7x:2x2x1
jax: 0.10.0
libtpu: 0.0.40
codegen_flags: <defaults>
</compile_context>

<pallas_src>
import functools

import jax
import jax.numpy as jnp
from jax import lax
from jax.experimental import pallas as pl
from jax.experimental.pallas import tpu as pltpu

K = 6       # ConvTranspose2d kernel size
STRIDE = 2
PAD = 2
EPS = 1e-5

_VMEM_LIMIT = 32 * 1024 * 1024  # v7x has 64 MiB physical VMEM per TC; leave headroom


# --------------------------------------------------------------------------------------
# Kernel 1: in-VMEM polyphase im2col + one folded MXU matmul + fused BN partial stats.
# --------------------------------------------------------------------------------------
def _convt_stats_kernel(xf_ref, w_ref, mask_ref, y_ref, stats_ref, *, offsets, mp):
    # xf_ref:   (cin, pflat)      flattened zero-padded input for this sample
    # w_ref:    (4*cout, 9*cin)   folded polyphase weights (row = phase*cout + channel)
    # mask_ref: (1, mp)           1.0 on real output columns, 0.0 on junk columns
    # y_ref:    (4*cout, mp)      conv output (compute dtype; bias cancelled by BN)
    # stats_ref:(2, 4*cout)       row 0 = per-row sum, row 1 = per-row sum of squares
    taps = [xf_ref[:, off:off + mp] for off in offsets]          # 9 lane-offset windows
    rhs = jnp.concatenate(taps, axis=0)                          # (9*cin, mp) in VMEM
    y = jnp.dot(w_ref[...], rhs, preferred_element_type=jnp.float32)   # f32 accumulate
    y_ref[...] = y.astype(y_ref.dtype)
    ym = y * mask_ref[...]                                       # zero out junk columns
    stats_ref[0, :] = jnp.sum(ym, axis=1)                        # hidden under the MXU
    stats_ref[1, :] = jnp.sum(y * ym, axis=1)


# --------------------------------------------------------------------------------------
# Kernel 2: lane-dense normalize (precomputed per-row scale/shift) + ReLU.
# --------------------------------------------------------------------------------------
def _bn_relu_kernel(y_ref, scale_ref, shift_ref, o_ref):
    y = y_ref[...].astype(jnp.float32)
    o_ref[...] = jnp.maximum(y * scale_ref[...] + shift_ref[...], 0.0)


def up_conv_forward(x, w, b, gamma, beta, *, compute_dtype=jnp.bfloat16):
    """x: (N, Cin, H, W) NCHW.  w: (Cin, Cout, K, K) (PyTorch ConvTranspose2d layout).
    b is accepted for API parity but unused: a per-channel bias is exactly cancelled by
    training-mode BatchNorm's mean subtraction.  Returns (N, Cout, 2H, 2W) float32.

    compute_dtype=bfloat16 (default) halves the dominant DMA bytes and hits MXU bf16
    peak; accumulation and BN statistics stay f32.  Use float32 for bitwise-tight
    agreement with the f32 reference."""
    del b  # cancelled by BN (see note above)

    n, cin, h, wsp = x.shape
    cout = w.shape[1]
    oh, ow = STRIDE * h, STRIDE * wsp
    wp = wsp + 2                  # padded row width (= matmul column stride per row)
    mp = h * wp                   # matmul columns per sample (includes 2 junk cols/row)
    pflat = (h + 3) * wp          # flattened padded length (+1 slack row for tap reach)

    # ---- glue: folded polyphase weights --------------------------------------------
    # y[o, 2qh+ph, 2qw+pw] = sum_{i,jh,jw} x[i, qh+jh-1, qw+jw-1] * w[i, o, 4+ph-2jh, 4+pw-2jw]
    w_rows = []
    for ph in range(2):
        for pw in range(2):
            sub = w[:, :, (4 + ph)::-2, (4 + pw)::-2]                  # (cin, cout, 3, 3)
            w_rows.append(jnp.transpose(sub, (1, 2, 3, 0)).reshape(cout, 9 * cin))
    w_all = jnp.stack(w_rows, axis=0).reshape(4 * cout, 9 * cin).astype(compute_dtype)

    # ---- glue: flattened zero-padded input (1x traffic; no im2col materialization) --
    xp = jnp.pad(x, ((0, 0), (0, 0), (1, 2), (1, 1)))                  # (n, cin, h+3, w+2)
    xf = xp.reshape(n, cin, pflat).astype(compute_dtype)

    # valid-column mask: column p = qh*wp + qw is a real output position iff qw < W
    mask = (jnp.arange(mp) % wp < wsp).astype(jnp.float32).reshape(1, mp)

    # tap (jh, jw) of column p reads flat index p + jh*wp + jw
    offsets = tuple(jh * wp + jw for jh in range(3) for jw in range(3))

    # ---- Pallas kernel 1: conv (single folded matmul) + BN partial stats ------------
    kernel1 = functools.partial(_convt_stats_kernel, offsets=offsets, mp=mp)
    y_conv, stats = pl.pallas_call(
        kernel1,
        out_shape=(
            jax.ShapeDtypeStruct((n, 4 * cout, mp), compute_dtype),
            jax.ShapeDtypeStruct((n, 2, 4 * cout), jnp.float32),
        ),
        grid_spec=pltpu.PrefetchScalarGridSpec(
            num_scalar_prefetch=0,
            grid=(n,),
            in_specs=[
                pl.BlockSpec((None, cin, pflat), lambda i: (i, 0, 0)),
                pl.BlockSpec((4 * cout, 9 * cin), lambda i: (0, 0)),   # resident weights
                pl.BlockSpec((1, mp), lambda i: (0, 0)),
            ],
            out_specs=[
                pl.BlockSpec((None, 4 * cout, mp), lambda i: (i, 0, 0)),
                pl.BlockSpec((None, 2, 4 * cout), lambda i: (i, 0, 0)),  # lane-dense stats
            ],
        ),
        compiler_params=pltpu.CompilerParams(
            dimension_semantics=("parallel",),
            vmem_limit_bytes=_VMEM_LIMIT,
        ),
    )(xf, w_all, mask)

    # ---- glue: finish BN statistics (tiny (cout,) reductions, all f32) --------------
    cnt = jnp.float32(n * 4 * h * wsp)                        # = N * OH * OW per channel
    ch_sum = stats[:, 0, :].sum(axis=0).reshape(4, cout).sum(axis=0)
    ch_ssq = stats[:, 1, :].sum(axis=0).reshape(4, cout).sum(axis=0)
    mean = ch_sum / cnt
    var = jnp.maximum(ch_ssq / cnt - mean * mean, 0.0)        # biased var (BN train mode)
    scale = gamma * lax.rsqrt(var + EPS)
    shift = beta - mean * scale
    scale_rows = jnp.tile(scale, 4).reshape(4 * cout, 1)      # row = phase*cout + channel
    shift_rows = jnp.tile(shift, 4).reshape(4 * cout, 1)

    # ---- Pallas kernel 2: lane-dense, pipelined normalize + ReLU --------------------
    y_norm = pl.pallas_call(
        _bn_relu_kernel,
        out_shape=jax.ShapeDtypeStruct((n, 4 * cout, mp), jnp.float32),
        grid_spec=pltpu.PrefetchScalarGridSpec(
            num_scalar_prefetch=0,
            grid=(n,),
            in_specs=[
                pl.BlockSpec((None, 4 * cout, mp), lambda i: (i, 0, 0)),
                pl.BlockSpec((4 * cout, 1), lambda i: (0, 0)),
                pl.BlockSpec((4 * cout, 1), lambda i: (0, 0)),
            ],
            out_specs=pl.BlockSpec((None, 4 * cout, mp), lambda i: (i, 0, 0)),
        ),
        compiler_params=pltpu.CompilerParams(
            dimension_semantics=("parallel",),
            vmem_limit_bytes=_VMEM_LIMIT,
        ),
    )(y_conv, scale_rows, shift_rows)

    # ---- glue: drop junk columns + interleave the 4 phases back into NCHW -----------
    # (one fused XLA slice+transpose pass; see TODO at the top of the file)
    y6 = y_norm.reshape(n, 2, 2, cout, h, wp)[:, :, :, :, :, :wsp]   # (n, ph, pw, c, qh, qw)
    out = jnp.transpose(y6, (0, 3, 4, 1, 5, 2)).reshape(n, cout, oh, ow)
    return out


def _reference(x, w, b, gamma, beta):
    """Pure-JAX reference for PyTorch ConvTranspose2d(k=6,s=2,p=2)+BN(train)+ReLU."""
    w_c = jnp.transpose(w, (1, 0, 2, 3))[:, :, ::-1, ::-1]
    y = lax.conv_general_dilated(
        x, w_c, window_strides=(1, 1),
        padding=[(K - 1 - PAD, K - 1 - PAD)] * 2,
        lhs_dilation=(STRIDE, STRIDE),
        dimension_numbers=("NCHW", "OIHW", "NCHW"),
    ) + b[None, :, None, None]
    mean = y.mean(axis=(0, 2, 3), keepdims=True)
    var = ((y - mean) ** 2).mean(axis=(0, 2, 3), keepdims=True)
    yn = (y - mean) * lax.rsqrt(var + EPS) * gamma[None, :, None, None] + beta[None, :, None, None]
    return jnp.maximum(yn, 0.0)


if __name__ == "__main__":
    key = jax.random.PRNGKey(0)
    k1, k2, k3, k4, k5 = jax.random.split(key, 5)

    N, IN_CH, OUT_CH, H, W_SP = 2, 4, 8, 16, 16
    x = jax.random.normal(k1, (N, IN_CH, H, W_SP), jnp.float32)
    w = 0.1 * jax.random.normal(k2, (IN_CH, OUT_CH, K, K), jnp.float32)   # ConvTranspose2d weight
    b = 0.1 * jax.random.normal(k3, (OUT_CH,), jnp.float32)               # ConvTranspose2d bias
    gamma = 1.0 + 0.1 * jax.random.normal(k4, (OUT_CH,), jnp.float32)     # BN weight
    beta = 0.1 * jax.random.normal(k5, (OUT_CH,), jnp.float32)            # BN bias

    ref = _reference(x, w, b, gamma, beta)

    # Default (bf16 compute, f32 accumulation / BN stats) path.
    out_bf16 = jax.jit(up_conv_forward)(x, w, b, gamma, beta)
    out_bf16 = jax.block_until_ready(out_bf16)
    assert out_bf16.shape == (N, OUT_CH, STRIDE * H, STRIDE * W_SP), out_bf16.shape
    err_bf16 = float(jnp.max(jnp.abs(out_bf16 - ref)))
    assert err_bf16 < 1e-1, f"bf16 path max abs error vs reference: {err_bf16}"

    # f32 path verifies the algorithm tightly against the reference.
    out_f32 = jax.jit(
        functools.partial(up_conv_forward, compute_dtype=jnp.float32)
    )(x, w, b, gamma, beta)
    out_f32 = jax.block_until_ready(out_f32)
    err_f32 = float(jnp.max(jnp.abs(out_f32 - ref)))
    assert err_f32 < 2e-3, f"f32 path max abs error vs reference: {err_f32}"

    print("KERNEL_OK")
</pallas_src>

<mosaic_0001>
module attributes {stable_mosaic.version = 11 : i64} {
  func.func @_convt_stats_kernel(%arg0: i32, %arg1: memref<1x4x342xbf16, #tpu.memory_space<vmem>>, %arg2: memref<32x36xbf16, #tpu.memory_space<vmem>>, %arg3: memref<1x288xf32, #tpu.memory_space<vmem>>, %arg4: memref<1x32x288xbf16, #tpu.memory_space<vmem>>, %arg5: memref<1x2x32xf32, #tpu.memory_space<vmem>>) attributes {dimension_semantics = [#tpu.dimension_semantics<parallel>], iteration_bounds = array<i64: 2>, scalar_prefetch = 0 : i64, scratch_operands = 0 : i64, tpu.core_type = #tpu.core_type<tc>, window_params = [{transform_indices = @transform_0, window_bounds = array<i64: 1, 4, 342>}, {pipeline_mode = #tpu.pipeline_mode<synchronous>, transform_indices = @transform_1, window_bounds = array<i64: 32, 36>}, {pipeline_mode = #tpu.pipeline_mode<synchronous>, transform_indices = @transform_2, window_bounds = array<i64: 1, 288>}, {transform_indices = @transform_3, window_bounds = array<i64: 1, 32, 288>}, {transform_indices = @transform_4, window_bounds = array<i64: 1, 2, 32>}]} {
    %c0 = arith.constant 0 : index
    %c0_0 = arith.constant 0 : index
    %c0_1 = arith.constant 0 : index
    %0 = vector.load %arg1[%c0, %c0_0, %c0_1] : memref<1x4x342xbf16, #tpu.memory_space<vmem>>, vector<1x4x288xbf16>
    %1 = vector.shape_cast %0 : vector<1x4x288xbf16> to vector<4x288xbf16>
    %c0_2 = arith.constant 0 : index
    %c0_3 = arith.constant 0 : index
    %c1 = arith.constant 1 : index
    %2 = vector.load %arg1[%c0_2, %c0_3, %c1] : memref<1x4x342xbf16, #tpu.memory_space<vmem>>, vector<1x4x288xbf16>
    %3 = vector.shape_cast %2 : vector<1x4x288xbf16> to vector<4x288xbf16>
    %c0_4 = arith.constant 0 : index
    %c0_5 = arith.constant 0 : index
    %c2 = arith.constant 2 : index
    %4 = vector.load %arg1[%c0_4, %c0_5, %c2] : memref<1x4x342xbf16, #tpu.memory_space<vmem>>, vector<1x4x288xbf16>
    %5 = vector.shape_cast %4 : vector<1x4x288xbf16> to vector<4x288xbf16>
    %c0_6 = arith.constant 0 : index
    %c0_7 = arith.constant 0 : index
    %c18 = arith.constant 18 : index
    %6 = vector.load %arg1[%c0_6, %c0_7, %c18] : memref<1x4x342xbf16, #tpu.memory_space<vmem>>, vector<1x4x288xbf16>
    %7 = vector.shape_cast %6 : vector<1x4x288xbf16> to vector<4x288xbf16>
    %c0_8 = arith.constant 0 : index
    %c0_9 = arith.constant 0 : index
    %c19 = arith.constant 19 : index
    %8 = vector.load %arg1[%c0_8, %c0_9, %c19] : memref<1x4x342xbf16, #tpu.memory_space<vmem>>, vector<1x4x288xbf16>
    %9 = vector.shape_cast %8 : vector<1x4x288xbf16> to vector<4x288xbf16>
    %c0_10 = arith.constant 0 : index
    %c0_11 = arith.constant 0 : index
    %c20 = arith.constant 20 : index
    %10 = vector.load %arg1[%c0_10, %c0_11, %c20] : memref<1x4x342xbf16, #tpu.memory_space<vmem>>, vector<1x4x288xbf16>
    %11 = vector.shape_cast %10 : vector<1x4x288xbf16> to vector<4x288xbf16>
    %c0_12 = arith.constant 0 : index
    %c0_13 = arith.constant 0 : index
    %c36 = arith.constant 36 : index
    %12 = vector.load %arg1[%c0_12, %c0_13, %c36] : memref<1x4x342xbf16, #tpu.memory_space<vmem>>, vector<1x4x288xbf16>
    %13 = vector.shape_cast %12 : vector<1x4x288xbf16> to vector<4x288xbf16>
    %c0_14 = arith.constant 0 : index
    %c0_15 = arith.constant 0 : index
    %c37 = arith.constant 37 : index
    %14 = vector.load %arg1[%c0_14, %c0_15, %c37] : memref<1x4x342xbf16, #tpu.memory_space<vmem>>, vector<1x4x288xbf16>
    %15 = vector.shape_cast %14 : vector<1x4x288xbf16> to vector<4x288xbf16>
    %c0_16 = arith.constant 0 : index
    %c0_17 = arith.constant 0 : index
    %c38 = arith.constant 38 : index
    %16 = vector.load %arg1[%c0_16, %c0_17, %c38] : memref<1x4x342xbf16, #tpu.memory_space<vmem>>, vector<1x4x288xbf16>
    %17 = vector.shape_cast %16 : vector<1x4x288xbf16> to vector<4x288xbf16>
    %18 = tpu.concatenate %1, %3, %5, %7, %9, %11, %13, %15, %17 in 0 : vector<4x288xbf16>, vector<4x288xbf16>, vector<4x288xbf16>, vector<4x288xbf16>, vector<4x288xbf16>, vector<4x288xbf16>, vector<4x288xbf16>, vector<4x288xbf16>, vector<4x288xbf16> -> vector<36x288xbf16>
    %c0_18 = arith.constant 0 : index
    %c0_19 = arith.constant 0 : index
    %19 = vector.load %arg2[%c0_18, %c0_19] : memref<32x36xbf16, #tpu.memory_space<vmem>>, vector<32x36xbf16>
    %cst = arith.constant dense<0.000000e+00> : vector<32x288xf32>
    %20 = tpu.matmul %19, %18, %cst {dimension_numbers = #tpu.dot_dimension_numbers<[1], [0], [0], [1], [0, 0, 1, 1], [], []>} : vector<32x36xbf16>, vector<36x288xbf16>, vector<32x288xf32> -> vector<32x288xf32>
    %21 = arith.truncf %20 : vector<32x288xf32> to vector<32x288xbf16>
    %c0_20 = arith.constant 0 : index
    %c0_21 = arith.constant 0 : index
    %c0_22 = arith.constant 0 : index
    %22 = vector.load %arg4[%c0_20, %c0_21, %c0_22] : memref<1x32x288xbf16, #tpu.memory_space<vmem>>, vector<1x32x288xbf16>
    %23 = vector.shape_cast %22 : vector<1x32x288xbf16> to vector<32x288xbf16>
    %24 = vector.shape_cast %21 : vector<32x288xbf16> to vector<1x32x288xbf16>
    tpu.vector_store %arg4[%c0_20, %c0_21, %c0_22], %24 {strides = array<i32>} : memref<1x32x288xbf16, #tpu.memory_space<vmem>>, vector<1x32x288xbf16>,
    %c0_23 = arith.constant 0 : index
    %c0_24 = arith.constant 0 : index
    %25 = vector.load %arg3[%c0_23, %c0_24] : memref<1x288xf32, #tpu.memory_space<vmem>>, vector<1x288xf32>
    %26 = vector.broadcast %25 : vector<1x288xf32> to vector<32x288xf32>
    %27 = arith.mulf %20, %26 : vector<32x288xf32>
    %cst_25 = arith.constant dense<0.000000e+00> : vector<32xf32>
    %28 = vector.multi_reduction <add>, %27, %cst_25 [1] : vector<32x288xf32> to vector<32xf32>
    %c0_26 = arith.constant 0 : index
    %c0_27 = arith.constant 0 : index
    %c0_28 = arith.constant 0 : index
    %29 = vector.load %arg5[%c0_26, %c0_27, %c0_28] : memref<1x2x32xf32, #tpu.memory_space<vmem>>, vector<1x1x32xf32>
    %30 = vector.shape_cast %29 : vector<1x1x32xf32> to vector<32xf32>
    %31 = vector.shape_cast %28 : vector<32xf32> to vector<1x1x32xf32>
    tpu.vector_store %arg5[%c0_26, %c0_27, %c0_28], %31 {strides = array<i32>} : memref<1x2x32xf32, #tpu.memory_space<vmem>>, vector<1x1x32xf32>,
    %32 = arith.mulf %20, %27 : vector<32x288xf32>
    %cst_29 = arith.constant dense<0.000000e+00> : vector<32xf32>
    %33 = vector.multi_reduction <add>, %32, %cst_29 [1] : vector<32x288xf32> to vector<32xf32>
    %c0_30 = arith.constant 0 : index
    %c1_31 = arith.constant 1 : index
    %c0_32 = arith.constant 0 : index
    %34 = vector.load %arg5[%c0_30, %c1_31, %c0_32] : memref<1x2x32xf32, #tpu.memory_space<vmem>>, vector<1x1x32xf32>
    %35 = vector.shape_cast %34 : vector<1x1x32xf32> to vector<32xf32>
    %36 = vector.shape_cast %33 : vector<32xf32> to vector<1x1x32xf32>
    tpu.vector_store %arg5[%c0_30, %c1_31, %c0_32], %36 {strides = array<i32>} : memref<1x2x32xf32, #tpu.memory_space<vmem>>, vector<1x1x32xf32>,
    return
  }
  func.func @transform_0(%arg0: i32) -> (i32, i32, i32) {
    %c0_i32 = arith.constant 0 : i32
    %c0_i32_0 = arith.constant 0 : i32
    %c0_i32_1 = arith.constant 0 : i32
    return %arg0, %c0_i32, %c0_i32_0 : i32, i32, i32
  }
  func.func @transform_1(%arg0: i32) -> (i32, i32) {
    %c0_i32 = arith.constant 0 : i32
    %c0_i32_0 = arith.constant 0 : i32
    %c0_i32_1 = arith.constant 0 : i32
    return %c0_i32, %c0_i32_0 : i32, i32
  }
  func.func @transform_2(%arg0: i32) -> (i32, i32) {
    %c0_i32 = arith.constant 0 : i32
    %c0_i32_0 = arith.constant 0 : i32
    %c0_i32_1 = arith.constant 0 : i32
    return %c0_i32, %c0_i32_0 : i32, i32
  }
  func.func @transform_3(%arg0: i32) -> (i32, i32, i32) {
    %c0_i32 = arith.constant 0 : i32
    %c0_i32_0 = arith.constant 0 : i32
    %c0_i32_1 = arith.constant 0 : i32
    return %arg0, %c0_i32, %c0_i32_0 : i32, i32, i32
  }
  func.func @transform_4(%arg0: i32) -> (i32, i32, i32) {
    %c0_i32 = arith.constant 0 : i32
    %c0_i32_0 = arith.constant 0 : i32
    %c0_i32_1 = arith.constant 0 : i32
    return %arg0, %c0_i32, %c0_i32_0 : i32, i32, i32
  }
}

module attributes {stable_mosaic.version = 11 : i64} {
  func.func @_bn_relu_kernel(%arg0: i32, %arg1: memref<1x32x288xbf16, #tpu.memory_space<vmem>>, %arg2: memref<32x1xf32, #tpu.memory_space<vmem>>, %arg3: memref<32x1xf32, #tpu.memory_space<vmem>>, %arg4: memref<1x32x288xf32, #tpu.memory_space<vmem>>) attributes {dimension_semantics = [#tpu.dimension_semantics<parallel>], iteration_bounds = array<i64: 2>, scalar_prefetch = 0 : i64, scratch_operands = 0 : i64, tpu.core_type = #tpu.core_type<tc>, window_params = [{transform_indices = @transform_0, window_bounds = array<i64: 1, 32, 288>}, {pipeline_mode = #tpu.pipeline_mode<synchronous>, transform_indices = @transform_1, window_bounds = array<i64: 32, 1>}, {pipeline_mode = #tpu.pipeline_mode<synchronous>, transform_indices = @transform_2, window_bounds = array<i64: 32, 1>}, {transform_indices = @transform_3, window_bounds = array<i64: 1, 32, 288>}]} {
    %c0 = arith.constant 0 : index
    %c0_0 = arith.constant 0 : index
    %c0_1 = arith.constant 0 : index
    %0 = vector.load %arg1[%c0, %c0_0, %c0_1] : memref<1x32x288xbf16, #tpu.memory_space<vmem>>, vector<1x32x288xbf16>
    %1 = vector.shape_cast %0 : vector<1x32x288xbf16> to vector<32x288xbf16>
    %2 = arith.extf %1 : vector<32x288xbf16> to vector<32x288xf32>
    %c0_2 = arith.constant 0 : index
    %c0_3 = arith.constant 0 : index
    %3 = vector.load %arg2[%c0_2, %c0_3] : memref<32x1xf32, #tpu.memory_space<vmem>>, vector<32x1xf32>
    %4 = vector.broadcast %3 : vector<32x1xf32> to vector<32x288xf32>
    %5 = arith.mulf %2, %4 : vector<32x288xf32>
    %c0_4 = arith.constant 0 : index
    %c0_5 = arith.constant 0 : index
    %6 = vector.load %arg3[%c0_4, %c0_5] : memref<32x1xf32, #tpu.memory_space<vmem>>, vector<32x1xf32>
    %7 = vector.broadcast %6 : vector<32x1xf32> to vector<32x288xf32>
    %8 = arith.addf %5, %7 : vector<32x288xf32>
    %cst = arith.constant 0.000000e+00 : f32
    %9 = vector.broadcast %cst : f32 to vector<32x288xf32>
    %10 = arith.maximumf %8, %9 : vector<32x288xf32>
    %c0_6 = arith.constant 0 : index
    %c0_7 = arith.constant 0 : index
    %c0_8 = arith.constant 0 : index
    %11 = vector.load %arg4[%c0_6, %c0_7, %c0_8] : memref<1x32x288xf32, #tpu.memory_space<vmem>>, vector<1x32x288xf32>
    %12 = vector.shape_cast %11 : vector<1x32x288xf32> to vector<32x288xf32>
    %13 = vector.shape_cast %10 : vector<32x288xf32> to vector<1x32x288xf32>
    tpu.vector_store %arg4[%c0_6, %c0_7, %c0_8], %13 {strides = array<i32>} : memref<1x32x288xf32, #tpu.memory_space<vmem>>, vector<1x32x288xf32>,
    return
  }
  func.func @transform_0(%arg0: i32) -> (i32, i32, i32) {
    %c0_i32 = arith.constant 0 : i32
    %c0_i32_0 = arith.constant 0 : i32
    %c0_i32_1 = arith.constant 0 : i32
    return %arg0, %c0_i32, %c0_i32_0 : i32, i32, i32
  }
  func.func @transform_1(%arg0: i32) -> (i32, i32) {
    %c0_i32 = arith.constant 0 : i32
    %c0_i32_0 = arith.constant 0 : i32
    %c0_i32_1 = arith.constant 0 : i32
    return %c0_i32, %c0_i32_0 : i32, i32
  }
  func.func @transform_2(%arg0: i32) -> (i32, i32) {
    %c0_i32 = arith.constant 0 : i32
    %c0_i32_0 = arith.constant 0 : i32
    %c0_i32_1 = arith.constant 0 : i32
    return %c0_i32, %c0_i32_0 : i32, i32
  }
  func.func @transform_3(%arg0: i32) -> (i32, i32, i32) {
    %c0_i32 = arith.constant 0 : i32
    %c0_i32_0 = arith.constant 0 : i32
    %c0_i32_1 = arith.constant 0 : i32
    return %arg0, %c0_i32, %c0_i32_0 : i32, i32, i32
  }
}

</mosaic_0001>

<bundles_post_ra>
// kernel: tile.18
= control target key start
LH: loop header
LB: loop body
LE: loop exit
PB: predicated region body
PF: predicated region fallthrough
CT: control target
= control target key end

     0   :  { %s22_s0 = inlined_call_operand.vmem [shape: f32[8], index: 0, kind: input, shape index: {}]   ;;  %s23_s1 = inlined_call_operand.vmem [shape: f32[4,8], index: 1, kind: output, shape index: {}]  }
   0x1   :  { %v4_v0 = vld [vmem:[%s22_s0] ss:$0 sm:$0xff] }
   0x2   :  { %5 = vst [vmem:[%s23_s1] sm:$0xf] %v4_v0 }

// kernel: tile.0
= control target key start
LH: loop header
LB: loop body
LE: loop exit
PB: predicated region body
PF: predicated region fallthrough
CT: control target
= control target key end

     0   :  { %s66_s8 = smov 125   ;;  %vm7_vm0 = vcmask 7168   ;;  %s67_s11 = smov 126   ;;  %s117_s0 = inlined_call_operand.vmem [shape: f32[4,8], index: 0, kind: input, shape index: {}]   ;;  %s118_s1 = inlined_call_operand.vmem [shape: f32[32,1], index: 1, kind: output, shape index: {}]  }
   0x1   :  { %v4_v0 = vld [vmem:[%s117_s0] sm:$0xf]  ;;  %s65_s0 = smov 127   ;;  %s68_s12 = smov 124  }
   0x2   :  { %5 = vst [vmem:[#allocation0] sm:$0xf] %v4_v0  ;;  %s69_s13 = smov 123   ;;  %s70_s14 = smov 122  }
   0x3   :  { %s71_s15 = smov 121  }
   0x9   :  { %v9_v1 = vld [vmem:[#allocation0] sm:$0xf]  }
   0xa   :  { %v21_v2 = vld [vmem:[#allocation0] sm:$0xf]   ;;  %10 = vrot.lane.b32.xlu0 %v9_v1, %s65_s0 }
   0xb   :  { %22 = vrot.lane.b32.xlu1 %v21_v2, %s66_s8  ;;  %v15_v3 = vld [vmem:[#allocation0] sm:$0xf]  }
   0xc   :  { %v27_v4 = vld [vmem:[#allocation0] sm:$0xf]  }
   0xd   :  { %v6_v5 = vld [vmem:[#allocation0] sm:$0xf]  }
   0xe   :  { %8 = vst.msk [vmem:[%s118_s1] ss:$8 sm:$0xf] %vm7_vm0, %v6_v5   ;;  %16 = vrot.lane.b32.xlu0 %v15_v3, %s67_s11  ;;  %v33_v6 = vld [vmem:[#allocation0] sm:$0xf]  }
   0xf   :  { %28 = vrot.lane.b32.xlu1 %v27_v4, %s68_s12  ;;  %v39_v7 = vld [vmem:[#allocation0] sm:$0xf]  }
  0x10   :  { %v45_v8 = vld [vmem:[#allocation0] sm:$0xf]  }
  0x12   :  { %34 = vrot.lane.b32.xlu0 %v33_v6, %s69_s13 }
  0x13   :  { %40 = vrot.lane.b32.xlu1 %v39_v7, %s70_s14 }
  0x16   :  { %46 = vrot.lane.b32.xlu0 %v45_v8, %s71_s15 }
  0x7c   :  { %v11_v9 = vpop.permute.xlu0 %10  }
  0x7d   :  { %v23_v10 = vpop.permute.xlu1 %22   ;;  %51 = vst.msk [vmem:[%s118_s1 + $0x1] ss:$8 sm:$0xf] %vm7_vm0, %v11_v9  }
  0x7e   :  { %53 = vst.msk [vmem:[%s118_s1 + $0x3] ss:$8 sm:$0xf] %vm7_vm0, %v23_v10  }
  0x80   :  { %v17_v11 = vpop.permute.xlu0 %16  }
  0x81   :  { %v29_v12 = vpop.permute.xlu1 %28   ;;  %52 = vst.msk [vmem:[%s118_s1 + $0x2] ss:$8 sm:$0xf] %vm7_vm0, %v17_v11  }
  0x82   :  { %54 = vst.msk [vmem:[%s118_s1 + $0x4] ss:$8 sm:$0xf] %vm7_vm0, %v29_v12  }
  0x84   :  { %v35_v13 = vpop.permute.xlu0 %34  }
  0x85   :  { %v41_v14 = vpop.permute.xlu1 %40   ;;  %55 = vst.msk [vmem:[%s118_s1 + $0x5] ss:$8 sm:$0xf] %vm7_vm0, %v35_v13  }
  0x86   :  { %56 = vst.msk [vmem:[%s118_s1 + $0x6] ss:$8 sm:$0xf] %vm7_vm0, %v41_v14  }
  0x88   :  { %v47_v15 = vpop.permute.xlu0 %46  }
  0x89   :  { %57 = vst.msk [vmem:[%s118_s1 + $0x7] ss:$8 sm:$0xf] %vm7_vm0, %v47_v15  }

// kernel: up_conv_forward.3
= control target key start
LH: loop header
LB: loop body
LE: loop exit
PB: predicated region body
PF: predicated region fallthrough
CT: control target
= control target key end

     0   :  { %s394_s12 = smov 0   ;;  %s457_s0 = inlined_call_operand.vmem [shape: bf16[2,32,288], index: 0, kind: input, shape index: {}]   ;;  %s458_s1 = inlined_call_operand.vmem [shape: f32[32,1], index: 1, kind: input, shape index: {}]   ;;  %s459_s2 = inlined_call_operand.vmem [shape: f32[32,1], index: 2, kind: input, shape index: {}]   ;;  %s460_s3 = inlined_call_operand.vmem [shape: f32[2,32,288], index: 3, kind: output, shape index: {}]  }
   0x1 LB: > { %s343_s13 = sadd.s32 4294967295, %s371_s12   ;;  %p347_p0 = scmp.ge.s32.totalorder %s371_s12, 1  ;;  %s371_s12 = sphi %s394_s12, %s13_s12  }
   0x2   : > { %p137_p1 = scmp.lt.s32.totalorder %s371_s12, 3 }
   0x4   : > { %p138_p2 = pnand %p347_p0, %p137_p1 }
   0x5   : > { %v193_v0 = vld [vmem:[%s458_s1 + $0x10] sm:$0xff] (!%p138_p2)  ;;  %v191_v1 = vld [vmem:[%s458_s1] sm:$0xff] (!%p138_p2)  ;;  %v373_v2 = vmov (!%p138_p2), 0   ;;  %v194_v3 = vld [vmem:[%s458_s1 + $0x18] sm:$0xff] (!%p138_p2)  ;;  %p161_p3 = scmp.lt.s32.totalorder (!%p138_p2), %s343_s13, 1  ;;  %vm277_vm0 = vcmask (!%p138_p2), 261120  }
   0x6   : > { %141 = sbr.rel (%p138_p2) target bundleno = 154 (0x9a), region = 32  ;;  %364 = vset.pattern.permute.xlu1 (!%p138_p2), %v373_v2  ;;  %363 = vset.pattern.permute.xlu0 (!%p138_p2), %v373_v2  ;;  %v192_v4 = vld [vmem:[%s458_s1 + $0x8] sm:$0xff] (!%p138_p2)  ;;  %v227_v6 = vld [vmem:[%s459_s2] sm:$0xff] (!%p138_p2)  ;;  %v230_v7 = vld [vmem:[%s459_s2 + $0x18] sm:$0xff] (!%p138_p2) }
   0x7   : > { %207 = vperm.xlu1 (!%p138_p2), %364, %v193_v0   ;;  %197 = vperm.xlu0 (!%p138_p2), %363, %v191_v1   ;;  %v228_v5 = vld [vmem:[%s459_s2 + $0x8] sm:$0xff] (!%p138_p2)  ;;  %v229_v8 = vld [vmem:[%s459_s2 + $0x10] sm:$0xff] (!%p138_p2) }
   0xb   : > { %212 = vperm.xlu1 (!%p138_p2), %364, %v194_v3   ;;  %202 = vperm.xlu0 (!%p138_p2), %363, %v192_v4  }
   0xd   : > { %s462_s13 = smov (!%p161_p3, %s343_s13), 1 }
   0xe   : > { %s352_s30 = smul.u32 48, %s462_s13 }
   0xf   : > { %238 = vperm.xlu1 %364, %v228_v5   ;;  %233 = vperm.xlu0 %363, %v227_v6   ;;  %s353_s7 = smul.u32 96, %s462_s13 }
  0x10   : > { %s165_s6 = scalar_lea.vmem %s457_s0, %s352_s30 }
  0x11   : > { %v171_v11 = vld [vmem:[%s165_s6] sm:$0xff]  ;;  %v178_v12 = vld [vmem:[%s165_s6 + $0x14] ss:$24 sps:$4 sm:$0xff]   ;;  %v175_v14 = vld [vmem:[%s165_s6 + $0x18] sm:$0xff]  ;;  %s436_s10 = scalar_lea.vmem %s460_s3, %s353_s7 }
  0x12   : > { %v173_v13 = vld [vmem:[%s165_s6 + $0xc] sm:$0xff]  ;;  %v176_v15 = vld [vmem:[%s165_s6 + $0x8] ss:$24 sps:$4 sm:$0xff]   ;;  %v179_v17 = vunpack.c.l.bf16 %v171_v11  ;;  %v184_v20 = vunpack.c.l.bf16 %v178_v12  ;;  %v185_v21 = vunpack.c.l.bf16 %v175_v14  ;;  %v180_v22 = vunpack.c.h.bf16 %v171_v11 }
  0x13   : > { %248 = vperm.xlu1 %364, %v230_v7   ;;  %243 = vperm.xlu0 %363, %v229_v8   ;;  %v177_v16 = vld [vmem:[%s165_s6 + $0x24] sm:$0xff]  ;;  %v182_v18 = vunpack.c.l.bf16 %v173_v13  ;;  %v183_v19 = vunpack.c.h.bf16 %v173_v13  ;;  %v181_v23 = vunpack.c.l.bf16 %v176_v15  ;;  %v186_v27 = vunpack.c.h.bf16 %v175_v14 }
  0x14   : > { %v188_v25 = vunpack.c.l.bf16 %v177_v16  ;;  %v187_v28 = vunpack.c.h.bf16 %v176_v15  ;;  %v189_v29 = vunpack.c.h.bf16 %v177_v16  ;;  %v190_v30 = vunpack.c.h.bf16 %v178_v12 }
  0x86   : > { %v208_v9 = vpop.permute.xlu1 %207  ;;  %v198_v10 = vpop.permute.xlu0 %197 }
  0x87   : > { %v215_v31 = vmul.f32 %v198_v10, %v179_v17  ;;  %v221_v35 = vmul.f32 %v208_v9, %v185_v21  ;;  %v216_v36 = vmul.f32 %v198_v10, %v180_v22  ;;  %v217_v37 = vmul.f32 %v198_v10, %v181_v23 }
  0x88   : > { %v222_v53 = vmul.f32 %v208_v9, %v186_v27  ;;  %v223_v54 = vmul.f32 %v208_v9, %v187_v28 }
  0x8a   : > { %v213_v24 = vpop.permute.xlu1 %212  ;;  %v203_v26 = vpop.permute.xlu0 %202 }
  0x8b   : > { %v218_v32 = vmul.f32 %v203_v26, %v182_v18  ;;  %v219_v33 = vmul.f32 %v203_v26, %v183_v19  ;;  %v220_v34 = vmul.f32 %v203_v26, %v184_v20  ;;  %v224_v38 = vmul.f32 %v213_v24, %v188_v25 }
  0x8c   : > { %v225_v45 = vmul.f32 %v213_v24, %v189_v29  ;;  %v226_v46 = vmul.f32 %v213_v24, %v190_v30 }
  0x8e   : > { %v239_v39 = vpop.permute.xlu1 %238  ;;  %v234_v40 = vpop.permute.xlu0 %233 }
  0x8f   : > { %v254_v41 = vadd.f32 %v239_v39, %v218_v32  ;;  %v255_v42 = vadd.f32 %v239_v39, %v219_v33  ;;  %v256_v43 = vadd.f32 %v239_v39, %v220_v34  ;;  %v251_v44 = vadd.f32 %v234_v40, %v215_v31 }
  0x90   : > { %v252_v47 = vadd.f32 %v234_v40, %v216_v36  ;;  %v253_v48 = vadd.f32 %v234_v40, %v217_v37 }
  0x91   : > { %v266_v49 = vmax.f32 %v254_v41, 0.0  ;;  %v267_v50 = vmax.f32 %v255_v42, 0.0  ;;  %v268_v51 = vmax.f32 %v256_v43, 0.0  ;;  %v263_v52 = vmax.f32 %v251_v44, 0.0 }
  0x92   : > { %v264_v55 = vmax.f32 %v252_v47, 0.0  ;;  %v265_v56 = vmax.f32 %v253_v48, 0.0  ;;  %v249_v57 = vpop.permute.xlu1 %248  ;;  %v244_v58 = vpop.permute.xlu0 %243 }
  0x93   : > { %279 = vst [vmem:[%s436_s10 + $0x18] sm:$0xff] %v266_v49  ;;  %280 = vst [vmem:[%s436_s10 + $0x20] sm:$0xff] %v267_v50  ;;  %v260_v59 = vadd.f32 %v249_v57, %v224_v38  ;;  %v261_v60 = vadd.f32 %v249_v57, %v225_v45  ;;  %v262_v61 = vadd.f32 %v249_v57, %v226_v46 }
  0x94   : > { %281 = vst.msk [vmem:[%s436_s10 + $0x28] sm:$0xff] %vm277_vm0, %v268_v51  ;;  %275 = vst [vmem:[%s436_s10] sm:$0xff] %v263_v52  ;;  %v257_v62 = vadd.f32 %v244_v58, %v221_v35  ;;  %v258_v63 = vadd.f32 %v244_v58, %v222_v53  ;;  %v259_v0 = vadd.f32 %v244_v58, %v223_v54 }
  0x95   : > { %276 = vst [vmem:[%s436_s10 + $0x8] sm:$0xff] %v264_v55  ;;  %278 = vst.msk [vmem:[%s436_s10 + $0x10] sm:$0xff] %vm277_vm0, %v265_v56  ;;  %v272_v1 = vmax.f32 %v260_v59, 0.0  ;;  %v273_v2 = vmax.f32 %v261_v60, 0.0  ;;  %v274_v3 = vmax.f32 %v262_v61, 0.0 }
  0x96   : > { %v269_v4 = vmax.f32 %v257_v62, 0.0  ;;  %v270_v5 = vmax.f32 %v258_v63, 0.0  ;;  %v271_v6 = vmax.f32 %v259_v0, 0.0 }
  0x97   : > { %285 = vst [vmem:[%s436_s10 + $0x48] sm:$0xff] %v272_v1  ;;  %286 = vst [vmem:[%s436_s10 + $0x50] sm:$0xff] %v273_v2 }
  0x98   : > { %287 = vst.msk [vmem:[%s436_s10 + $0x58] sm:$0xff] %vm277_vm0, %v274_v3  ;;  %282 = vst [vmem:[%s436_s10 + $0x30] sm:$0xff] %v269_v4 }
  0x99   : > { %283 = vst [vmem:[%s436_s10 + $0x38] sm:$0xff] %v270_v5  ;;  %284 = vst.msk [vmem:[%s436_s10 + $0x40] sm:$0xff] %vm277_vm0, %v271_v6 }
  0x9a PF: > { %s13_s12 = sadd.s32 1, %s371_s12  }
  0x9b   : > { %p10_p4 = scmp.ge.s32.totalorder %s13_s12, 4  }
  0x9d   :  { %12 = sbr.rel (!%p10_p4) target bundleno = 1 (0x1), region = 62 }

// kernel: up_conv_forward.2
= control target key start
LH: loop header
LB: loop body
LE: loop exit
PB: predicated region body
PF: predicated region fallthrough
CT: control target
= control target key end

     0   :  { %s887_s15 = smov 0   ;;  %s1020_s0 = inlined_call_operand.vmem [shape: bf16[2,4,342], index: 0, kind: input, shape index: {}]   ;;  %s1021_s1 = inlined_call_operand.vmem [shape: bf16[32,36], index: 1, kind: input, shape index: {}]   ;;  %s1022_s2 = inlined_call_operand.vmem [shape: f32[1,288], index: 2, kind: input, shape index: {}]   ;;  %s1023_s3 = inlined_call_operand.vmem [shape: bf16[2,32,288], index: 3, kind: output, shape index: {0}]   ;;  %s1024_s4 = inlined_call_operand.vmem [shape: f32[2,2,32], index: 4, kind: output, shape index: {1}]  }
   0x1 LB: > { %s771_s16 = sadd.s32 4294967295, %s850_s15   ;;  %p775_p0 = scmp.ge.s32.totalorder %s850_s15, 1  ;;  %s850_s15 = sphi %s887_s15, %s15_s15  }
   0x2   : > { %p165_p1 = scmp.lt.s32.totalorder %s850_s15, 3 }
   0x4   : > { %p166_p2 = pnand %p775_p0, %p165_p1 }
   0x5   : > { %p195_p3 = scmp.lt.s32.totalorder (!%p166_p2), %s771_s16, 1  ;;  %v216_v0 = vlaneseq (!%p166_p2)  ;;  %v852_v1 = vmov (!%p166_p2), 1983009808   ;;  %s853_s21 = smov (!%p166_p2), 126   ;;  %v919_v17 = vld [vmem:[%s1021_s1] sm:$0xff] (!%p166_p2)   ;;  %vm377_vm0 = vcmask (!%p166_p2), 293888  }
   0x6   : > { %169 = sbr.rel (%p166_p2) target bundleno = 566 (0x236), region = 32  ;;  %v214_v2 = vunpack.c.l.s4 (!%p166_p2), %v852_v1  ;;  %s854_s22 = smov (!%p166_p2), 127   ;;  %815 = vmatprep.mubr.msk.bf16.mxu1 (!%p166_p2), %vm377_vm0, %v919_v17  ;;  %v859_v18 = vmov (!%p166_p2), 0   ;;  %vm243_vm1 = vcmask (!%p166_p2), 1039360   ;;  %vm312_vm2 = vcmask (!%p166_p2), 1041408  }
   0x7   : > { %v898_v3 = vshrl.u32 (!%p166_p2), %v216_v0, 7  ;;  %s855_s23 = smov (!%p166_p2), 110   ;;  %s856_s24 = smov (!%p166_p2), 109   ;;  %425 = vmatprep.mubr.bf16.mxu0 (!%p166_p2), %v859_v18  ;;  %vm264_vm3 = vcmask (!%p166_p2), 900096   ;;  %vm254_vm4 = vcmask (!%p166_p2), 1031168   ;;  %vm329_vm5 = vcmask (!%p166_p2), 1045504  }
   0x8   : > { %v215_v4 = vunpack.c.0.s8 (!%p166_p2), %v214_v2  ;;  %s857_s25 = smov (!%p166_p2), 108   ;;  %s858_s26 = smov (!%p166_p2), 92   ;;  %vm322_vm6 = vcmask (!%p166_p2), 1043456   ;;  %vm282_vm7 = vcmask (!%p166_p2), 883712   ;;  %vm291_vm8 = vcmask (!%p166_p2), 752640  }
   0x9   : > { %s860_s29 = smov (!%p166_p2), 91   ;;  %s861_s30 = smov (!%p166_p2), 90   ;;  %vm273_vm9 = vcmask (!%p166_p2), 891904   ;;  %vm300_vm10 = vcmask (!%p166_p2), 744448   ;;  %vm309_vm11 = vcmask (!%p166_p2), 736256   ;;  %vm536_vm12 = vcmask (!%p166_p2), 257024  }
   0xa   : > { %v218_v5 = vsub.s32 (!%p166_p2), %v215_v4, %v898_v3  ;;  %vm574_vm13 = vcmask (!%p166_p2), 261120   ;;  %vm609_vm14 = vcmask (!%p166_p2), 130112   ;;  %vm616_vm15 = vcmask (!%p166_p2), 195712  }
   0xd   : > { %s1026_s16 = smov (!%p195_p3, %s771_s16), 1 }
   0xe   : > { %s820_s17 = smul.u32 6, %s1026_s16  ;;  %s778_s13 = sshll.u32 %s1026_s16, 1 }
   0xf   : > { %s821_s9 = smul.u32 48, %s1026_s16  ;;  %s208_s18 = scalar_lea.vmem %s1024_s4, %s778_s13 }
  0x10   : > { %s199_s20 = scalar_lea.vmem %s1020_s0, %s820_s17 }
  0x11   : > { %v210_v6 = vld [vmem:[%s199_s20] sm:$0x3f]  ;;  %s976_s12 = scalar_lea.vmem %s1023_s3, %s821_s9 }
  0x12   : > { %v905_v7 = vrot.slane %v210_v6, %v218_v5  ;;  %v228_v8 = vcombine.low %v210_v6, %v210_v6  ;;  %v212_v10 = vcombine.high %v210_v6, %v210_v6 }
  0x14   : > { %250 = vrot.lane.b32.xlu1 %v905_v7, %s853_s21  ;;  %241 = vrot.lane.b32.xlu0 %v905_v7, %s854_s22  ;;  %v235_v9 = vrot.slane %v228_v8, %v218_v5  ;;  %v246_v12 = vcombine.low %v905_v7, %v905_v7  ;;  %v226_v13 = vrot.slane %v212_v10, %v218_v5 }
  0x15   : > { %v227_v15 = vcombine.high %v905_v7, %v905_v7 }
  0x16   : > { %v236_v11 = vcombine.high %v235_v9, %v235_v9  ;;  %v247_v14 = vcombine.low %v226_v13, %v226_v13  ;;  %v257_v16 = vcombine.low %v235_v9, %v235_v9 }
  0x18   : > { %237 = vrot.lane.b32.xlu1 %v235_v9, %s854_s22  ;;  %260 = vrot.lane.b32.xlu0 %v235_v9, %s855_s23 }
  0x1c   : > { %239 = vrot.lane.b32.xlu0 %v236_v11, %s854_s22  ;;  %248 = vrot.lane.b32.xlu1 %v246_v12, %s853_s21 }
  0x20   : > { %262 = vrot.lane.b32.xlu1 %v246_v12, %s855_s23  ;;  %252 = vrot.lane.b32.xlu0 %v247_v14, %s853_s21 }
  0x24   : > { %269 = vrot.lane.b32.xlu1 %v227_v15, %s856_s24  ;;  %258 = vrot.lane.b32.xlu0 %v257_v16, %s855_s23 }
  0x28   : > { %278 = vrot.lane.b32.xlu1 %v236_v11, %s857_s25  ;;  %271 = vrot.lane.b32.xlu0 %v226_v13, %s856_s24 }
  0x2c   : > { %267 = vrot.lane.b32.xlu1 %v905_v7, %s856_s24  ;;  %280 = vrot.lane.b32.xlu0 %v905_v7, %s857_s25 }
  0x30   : > { %287 = vrot.lane.b32.xlu1 %v905_v7, %s858_s26  ;;  %276 = vrot.lane.b32.xlu0 %v235_v9, %s857_s25 }
  0x34   : > { %285 = vrot.lane.b32.xlu1 %v246_v12, %s858_s26  ;;  %289 = vrot.lane.b32.xlu0 %v247_v14, %s858_s26 }
  0x38   : > { %298 = vrot.lane.b32.xlu1 %v246_v12, %s860_s29  ;;  %296 = vrot.lane.b32.xlu0 %v235_v9, %s860_s29 }
  0x3c   : > { %303 = vrot.lane.b32.xlu1 %v905_v7, %s861_s30  ;;  %294 = vrot.lane.b32.xlu0 %v257_v16, %s860_s29  ;;  %v843_v16 = vld [vmem:[%s1021_s1 + $0x8] sm:$0xff]  }
  0x40   : > { %307 = vrot.lane.b32.xlu1 %v226_v13, %s861_s30  ;;  %305 = vrot.lane.b32.xlu0 %v227_v15, %s861_s30 }
  0x86   : > { %v251_v19 = vpop.permute.xlu1 %250  ;;  %v242_v20 = vpop.permute.xlu0 %241 }
  0x87   : > { %v321_v27 = vsel %vm312_vm2, %v226_v13, %v242_v20 }
  0x8a   : > { %v238_v21 = vpop.permute.xlu1 %237  ;;  %v261_v22 = vpop.permute.xlu0 %260 }
  0x8e   : > { %v240_v23 = vpop.permute.xlu0 %239  ;;  %v249_v24 = vpop.permute.xlu1 %248 }
  0x8f   : > { %v245_v25 = vsel %vm243_vm1, %v240_v23, %v242_v20  ;;  %v244_v26 = vsel %vm243_vm1, %v238_v21, %v240_v23  ;;  %v255_v35 = vsel %vm254_vm4, %v249_v24, %v251_v19  ;;  %v556_v20 = vsub.s32 2, %v898_v3 }
  0x90   : > { %v318_v30 = vsel %vm312_vm2, %v227_v15, %v245_v25  ;;  %v315_v34 = vsel %vm312_vm2, %v905_v7, %v244_v26  ;;  %v548_v21 = vsub.s32 0, %v898_v3  ;;  %v552_v23 = vsub.s32 1, %v898_v3 }
  0x91   : > { %v324_v42 = vsel %vm322_vm6, %v315_v34, %v255_v35  ;;  %vm626_vm1 = vcmask 253952  }
  0x92   : > { %v263_v28 = vpop.permute.xlu1 %262  ;;  %v253_v29 = vpop.permute.xlu0 %252 }
  0x93   : > { %v266_v31 = vsel %vm264_vm3, %v261_v22, %v263_v28  ;;  %v256_v32 = vsel %vm254_vm4, %v251_v19, %v253_v29  ;;  %v328_v33 = vsel %vm322_vm6, %v321_v27, %v253_v29 }
  0x94   : > { %v337_v36 = vsel %vm329_vm5, %v328_v33, %v263_v28  ;;  %v326_v37 = vsel %vm322_vm6, %v318_v30, %v256_v32 }
  0x95   : > { %809 = vmatprep.subr.bf16.mxu1 %v337_v36  ;;  %v334_v38 = vsel %vm329_vm5, %v326_v37, %v266_v31 }
  0x96   : > { %v270_v39 = vpop.permute.xlu1 %269  ;;  %393 = vmatprep.subr.bf16.mxu0 %v334_v38  ;;  %810 = vmatpush3.bf16.msra.mxu1 %v337_v36  ;;  %v259_v40 = vpop.permute.xlu0 %258 }
  0x97   : > { %v265_v41 = vsel %vm264_vm3, %v259_v40, %v261_v22  ;;  %v544_v22 = vld [vmem:[%s1022_s2] sm:$0x7] }
  0x98   : > { %v331_v43 = vsel %vm329_vm5, %v324_v42, %v265_v41  ;;  %v557_v24 = vrot.slane %v544_v22, %v556_v20  ;;  %v549_v25 = vrot.slane %v544_v22, %v548_v21  ;;  %v971_v26 = vrot.slane %v544_v22, %v552_v23 }
  0x99   : > { %394 = vmatpush1.bf16.msra.mxu0 %v331_v43 }
  0x9a   : > { %v279_v44 = vpop.permute.xlu1 %278  ;;  %v272_v45 = vpop.permute.xlu0 %271 }
  0x9b   : > { %v275_v54 = vsel %vm273_vm9, %v270_v39, %v272_v45 }
  0x9e   : > { %v268_v46 = vpop.permute.xlu1 %267  ;;  %v281_v47 = vpop.permute.xlu0 %280 }
  0x9f   : > { %v284_v52 = vsel %vm282_vm7, %v279_v44, %v281_v47  ;;  %v347_v55 = vsel %vm312_vm2, %v272_v45, %v281_v47  ;;  %v274_v4 = vsel %vm273_vm9, %v268_v46, %v270_v39 }
  0xa0   : > { %v344_v56 = vsel %vm312_vm2, %v275_v54, %v284_v52 }
  0xa2   : > { %v288_v48 = vpop.permute.xlu1 %287  ;;  %v277_v49 = vpop.permute.xlu0 %276 }
  0xa3   : > { %v283_v60 = vsel %vm282_vm7, %v277_v49, %v279_v44 }
  0xa4   : > { %v341_v5 = vsel %vm312_vm2, %v274_v4, %v283_v60 }
  0xa6   : > { %v286_v50 = vpop.permute.xlu1 %285  ;;  %v290_v51 = vpop.permute.xlu0 %289 }
  0xa7   : > { %v293_v53 = vsel %vm291_vm8, %v288_v48, %v290_v51  ;;  %v353_v57 = vsel %vm322_vm6, %v347_v55, %v290_v51  ;;  %v292_v1 = vsel %vm291_vm8, %v286_v50, %v288_v48 }
  0xa8   : > { %v351_v63 = vsel %vm322_vm6, %v344_v56, %v293_v53  ;;  %v349_v9 = vsel %vm322_vm6, %v341_v5, %v292_v1 }
  0xaa   : > { %v299_v58 = vpop.permute.xlu1 %298  ;;  %v297_v59 = vpop.permute.xlu0 %296 }
  0xab   : > { %v302_v61 = vsel %vm300_vm10, %v297_v59, %v299_v58  ;;  %v361_v62 = vsel %vm329_vm5, %v353_v57, %v299_v58 }
  0xac   : > { %811 = vmatprep.subr.bf16.mxu1 %v361_v62  ;;  %v358_v2 = vsel %vm329_vm5, %v351_v63, %v302_v61 }
  0xad   : > { %395 = vmatprep.subr.bf16.mxu0 %v358_v2  ;;  %812 = vmatpush3.bf16.msra.mxu1 %v361_v62 }
  0xae   : > { %v304_v6 = vpop.permute.xlu1 %303  ;;  %v295_v7 = vpop.permute.xlu0 %294 }
  0xaf   : > { %v301_v8 = vsel %vm300_vm10, %v295_v7, %v297_v59 }
  0xb0   : > { %v355_v10 = vsel %vm329_vm5, %v349_v9, %v301_v8 }
  0xb1   : > { %396 = vmatpush1.bf16.msra.mxu0 %v355_v10 }
  0xb2   : > { %v308_v11 = vpop.permute.xlu1 %307  ;;  %v306_v12 = vpop.permute.xlu0 %305 }
  0xb3   : > { %v310_v13 = vsel %vm309_vm11, %v304_v6, %v306_v12  ;;  %v311_v14 = vsel %vm309_vm11, %v306_v12, %v308_v11  ;;  %819 = vmatprep.subr.msk.bf16.mxu1 %vm312_vm2, %v308_v11  ;;  %v391_v15 = vsel %vm312_vm2, %v308_v11, 0 }
  0xb4   : > { %781 = vmatprep.subr.msk.bf16.mxu0 %vm312_vm2, %v311_v14  ;;  %814 = vmatpush3.bf16.msra.mxu1 %v391_v15  ;;  %v385_v19 = vsel %vm312_vm2, %v310_v13, 0 }
  0xb5   : > { %398 = vmatpush1.bf16.msra.mxu0 %v385_v19 }
  0xb7   : > { %816 = vmatmul.mubr.msk.bf16.vlgmr.msra.gmra.mrb[0].mxu1 %vm377_vm0, %v843_v16 }
  0xb8   : > { %782 = vmatmul.mubr.msk.bf16.vlgmr.msra.gmra.mrb[0].mxu0 %vm377_vm0, %v919_v17 }
  0xb9   : > { %435 = vmatprep.mubr.bf16.mxu0 %v859_v18 }
  0xc0   : > { %783 = vmatmul.mubr.msk.bf16.gmra.mrb[4].mxu0 %vm377_vm0, %v843_v16  ;;  %vm623_vm0 = vcmask 261312  }
 0x18a   : > { %v817_v17 = vpop.f32.mrb[0].mxu1 }
 0x18b   : > { %v801_v18 = vpack.c.bf16 %v817_v17, %v817_v17  ;;  %v427_v27 = vpop.f32.mrb[0].mxu0  ;;  %v480_v28 = vpop.f32.mrb[1].mxu1  ;;  %v569_v50 = vmul.f32 %v817_v17, %v557_v24 }
 0x18c   : > { %v561_v29 = vmul.f32 %v549_v25, %v427_v27  ;;  %v797_v30 = vpack.c.bf16 %v480_v28, %v480_v28  ;;  %v563_v31 = vmul.f32 %v557_v24, %v480_v28  ;;  %v429_v32 = vpop.f32.mrb[1].mxu0  ;;  %v818_v33 = vpop.f32.mrb[2].mxu1 }
 0x18d   : > { %541 = vst.msk [vmem:[%s976_s12 + $0x20] sm:$0xf] %vm536_vm12, %v801_v18  ;;  %v796_v34 = vpack.c.bf16 %v429_v32, %v427_v27  ;;  %v562_v35 = vmul.f32 %v971_v26, %v429_v32  ;;  %v803_v36 = vpack.c.bf16 %v818_v33, %v818_v33  ;;  %v431_v37 = vpop.f32.mrb[2].mxu0  ;;  %v483_v38 = vpop.f32.mrb[3].mxu1  ;;  %v572_v61 = vmul.f32 %v818_v33, %v557_v24 }
 0x18e   : > { %v628_v39 = vmul.f32 %v561_v29, %v427_v27  ;;  %537 = vst.msk [vmem:[%s976_s12 + $0x8] sm:$0xf] %vm536_vm12, %v797_v30  ;;  %v630_v40 = vmul.f32 %v563_v31, %v480_v28  ;;  %v564_v41 = vmul.f32 %v549_v25, %v431_v37  ;;  %v433_v42 = vpop.f32.mrb[3].mxu0  ;;  %v799_v44 = vpack.c.bf16 %v483_v38, %v483_v38 }
 0x18f   : > { %535 = vst [vmem:[%s976_s12] sm:$0xff] %v796_v34  ;;  %v629_v43 = vmul.f32 %v562_v35, %v429_v32  ;;  %543 = vst.msk [vmem:[%s976_s12 + $0x2c] sm:$0xf] %vm536_vm12, %v803_v36  ;;  %v566_v45 = vmul.f32 %v557_v24, %v483_v38  ;;  %v798_v46 = vpack.c.bf16 %v433_v42, %v431_v37  ;;  %v575_v52 = vsel %vm574_vm13, %v563_v31, 0.0 }
 0x190   : > { %v631_v47 = vmul.f32 %v564_v41, %v431_v37  ;;  %v565_v48 = vmul.f32 %v971_v26, %v433_v42  ;;  %v573_v49 = vadd.f32 %v562_v35, %v561_v29  ;;  %539 = vst.msk [vmem:[%s976_s12 + $0x14] sm:$0xf] %vm536_vm12, %v799_v44  ;;  %v641_v57 = vsel %vm574_vm13, %v630_v40, 0.0 }
 0x191   : > { %v633_v51 = vmul.f32 %v566_v45, %v483_v38  ;;  %538 = vst [vmem:[%s976_s12 + $0xc] sm:$0xff] %v798_v46  ;;  %v640_v53 = vadd.f32 %v629_v43, %v628_v39  ;;  %v580_v59 = vsel %vm574_vm13, %v566_v45, 0.0  ;;  %v636_v8 = vmul.f32 %v817_v17, %v569_v50 }
 0x192   : > { %v632_v54 = vmul.f32 %v565_v48, %v433_v42  ;;  %v576_v55 = vadd.f32 %v575_v52, %v573_v49  ;;  %v579_v56 = vadd.f32 %v565_v48, %v564_v41  ;;  %v639_v19 = vmul.f32 %v818_v33, %v572_v61 }
 0x193   : > { %v437_v58 = vpop.f32.mrb[4].mxu0  ;;  %v642_v60 = vadd.f32 %v641_v57, %v640_v53  ;;  %v646_v7 = vsel %vm574_vm13, %v633_v51, 0.0  ;;  %v585_v21 = vsel %vm574_vm13, %v569_v50, 0.0  ;;  %v590_v18 = vsel %vm574_vm13, %v572_v61, 0.0 }
 0x194   : > { %577 = vadd.xlane.f32.xlu0 %v576_v55  ;;  %v567_v62 = vmul.f32 %v549_v25, %v437_v58  ;;  %v439_v63 = vpop.f32.mrb[5].mxu0  ;;  %v581_v1 = vadd.f32 %v580_v59, %v579_v56  ;;  %v645_v2 = vadd.f32 %v632_v54, %v631_v47  ;;  %v599_v31 = vand.u32 127, %v216_v0 }
 0x195   : > { %v800_v4 = vpack.c.bf16 %v439_v63, %v437_v58  ;;  %v568_v5 = vmul.f32 %v971_v26, %v439_v63  ;;  %v441_v6 = vpop.f32.mrb[6].mxu0 }
 0x196   : > { %v634_v9 = vmul.f32 %v567_v62, %v437_v58  ;;  %582 = vadd.xlane.f32.xlu1 %v581_v1  ;;  %v570_v10 = vmul.f32 %v549_v25, %v441_v6  ;;  %v443_v11 = vpop.f32.mrb[7].mxu0  ;;  %v647_v12 = vadd.f32 %v646_v7, %v645_v2  ;;  %v651_v25 = vsel %vm574_vm13, %v636_v8, 0.0 }
 0x197   : > { %540 = vst [vmem:[%s976_s12 + $0x18] sm:$0xff] %v800_v4  ;;  %v635_v13 = vmul.f32 %v568_v5, %v439_v63  ;;  %v802_v14 = vpack.c.bf16 %v443_v11, %v441_v6  ;;  %v571_v15 = vmul.f32 %v971_v26, %v443_v11  ;;  %v584_v16 = vadd.f32 %v568_v5, %v567_v62 }
 0x198   : > { %v637_v20 = vmul.f32 %v570_v10, %v441_v6  ;;  %643 = vadd.xlane.f32.xlu0 %v642_v60  ;;  %v656_v26 = vsel %vm574_vm13, %v639_v19, 0.0  ;;  %v604_v33 = vadd.s32 4294967288, %v599_v31  ;;  %v611_v34 = vadd.s32 4294967280, %v599_v31 }
 0x199   : > { %542 = vst [vmem:[%s976_s12 + $0x24] sm:$0xff] %v802_v14  ;;  %v638_v22 = vmul.f32 %v571_v15, %v443_v11  ;;  %v586_v23 = vadd.f32 %v585_v21, %v584_v16  ;;  %v650_v24 = vadd.f32 %v635_v13, %v634_v9  ;;  %v589_v17 = vadd.f32 %v571_v15, %v570_v10 }
 0x19a   : > { %v607_v36 = vsub.s32 %v604_v33, %v898_v3  ;;  %v618_v38 = vadd.s32 4294967272, %v599_v31  ;;  %v614_v39 = vsub.s32 %v611_v34, %v898_v3  ;;  %v602_v40 = vsub.s32 %v599_v31, %v898_v3 }
 0x19b   : > { %587 = vadd.xlane.f32.xlu1 %v586_v23  ;;  %v652_v27 = vadd.f32 %v651_v25, %v650_v24  ;;  %v591_v28 = vadd.f32 %v590_v18, %v589_v17  ;;  %v655_v29 = vadd.f32 %v638_v22, %v637_v20 }
 0x19c   : > { %648 = vadd.xlane.f32.xlu0 %v647_v12  ;;  %v621_v44 = vsub.s32 %v618_v38, %v898_v3 }
 0x19d   : > { %v657_v30 = vadd.f32 %v656_v26, %v655_v29 }
 0x19f   : > { %592 = vadd.xlane.f32.xlu1 %v591_v28 }
 0x1a0   : > { %653 = vadd.xlane.f32.xlu0 %v652_v27 }
 0x1a4   : > { %658 = vadd.xlane.f32.xlu0 %v657_v30 }
 0x221   : > { %v578_v32 = vpop.xlane.xlu0 %577 }
 0x222   : > { %v603_v45 = vrot.slane %v578_v32, %v602_v40 }
 0x223   : > { %v583_v35 = vpop.xlane.xlu1 %582 }
 0x224   : > { %v608_v42 = vrot.slane %v583_v35, %v607_v36 }
 0x225   : > { %v644_v37 = vpop.xlane.xlu0 %643 }
 0x226   : > { %v610_v47 = vsel %vm609_vm14, %v608_v42, %v603_v45  ;;  %v667_v53 = vrot.slane %v644_v37, %v602_v40 }
 0x228   : > { %v588_v41 = vpop.xlane.xlu1 %587 }
 0x229   : > { %v649_v43 = vpop.xlane.xlu0 %648  ;;  %v615_v0 = vrot.slane %v588_v41, %v614_v39 }
 0x22a   : > { %v671_v50 = vrot.slane %v649_v43, %v607_v36 }
 0x22b   : > { %v617_v51 = vsel %vm616_vm15, %v615_v0, %v610_v47 }
 0x22c   : > { %v593_v46 = vpop.xlane.xlu1 %592  ;;  %v672_v55 = vsel %vm609_vm14, %v671_v50, %v667_v53 }
 0x22d   : > { %v654_v48 = vpop.xlane.xlu0 %653  ;;  %v622_v49 = vrot.slane %v593_v46, %v621_v44 }
 0x22e   : > { %v676_v3 = vrot.slane %v654_v48, %v614_v39 }
 0x22f   : > { %v624_v52 = vsel %vm623_vm0, %v622_v49, %v617_v51 }
 0x230   : > { %627 = vst.msk [vmem:[%s208_s18] sm:$0x1] %vm626_vm1, %v624_v52  ;;  %v677_v57 = vsel %vm616_vm15, %v676_v3, %v672_v55 }
 0x231   : > { %v659_v54 = vpop.xlane.xlu0 %658 }
 0x232   : > { %v681_v56 = vrot.slane %v659_v54, %v621_v44 }
 0x234   : > { %v682_v58 = vsel %vm623_vm0, %v681_v56, %v677_v57 }
 0x235   : > { %684 = vst.msk [vmem:[%s208_s18 + $0x1] sm:$0x1] %vm626_vm1, %v682_v58 }
 0x236 PF: > { %s15_s15 = sadd.s32 1, %s850_s15  }
 0x237   : > { %p12_p4 = scmp.ge.s32.totalorder %s15_s15, 4  }
 0x239   :  { %14 = sbr.rel (!%p12_p4) target bundleno = 1 (0x1), region = 74 }

</bundles_post_ra>
